<compile_context>
chip_gen: v5e
topology: v5e:2x2
jax: 0.10.0
libtpu: 0.0.40
codegen_flags: <defaults>
</compile_context>

<pallas_src>
import functools

import jax
import jax.numpy as jnp
from jax.experimental import pallas as pl
from jax.experimental.pallas import tpu as pltpu

LANE = 128          # TPU lane width — everything is padded to this
NEG_INF = -1e30     # bias for padded logit lanes -> exp() underflows to exactly 0
GUMBEL_EPS = 1e-20
W3X_COL = 64        # column offset of the w3-x block inside the fused x-weight plane


def _round_up(n, m):
    return (n + m - 1) // m * m


def _softmax_lanes(v):
    """Row softmax over the full 128-lane axis; normalisation via EUP reciprocal."""
    m = jnp.max(v, axis=-1, keepdims=True)
    e = jnp.exp(v - m)
    return e * pl.reciprocal(jnp.sum(e, axis=-1, keepdims=True), approx=True)


def _place(v, src, dst):
    """Move the lane segment starting at `src` to start at `dst` (static XLU roll)."""
    s = (dst - src) % LANE
    return v if s == 0 else pltpu.roll(v, s, 1)


# --------------------------------------------------------------------------- #
# kernel
# --------------------------------------------------------------------------- #
def inference_net_kernel(data_ref, w_ref, b_ref, out_ref, *,
                         x_dim, y_dim, z_dim, inv_temp, mm_dtype):
    f32 = jnp.float32
    z, y = z_dim, y_dim

    data = data_ref[...]              # (TB,128): x@[0:x), u@[x:x+y), eps@[x+y:x+y+z)
    b = b_ref[...]                    # (8,128) f32 bias slab
    lane = jax.lax.broadcasted_iota(jnp.int32, out_ref.shape, 1)

    def mm(a, i):                     # full-width (TB,128)@(128,128) MXU, f32 accumulate
        return jnp.dot(a.astype(mm_dtype), w_ref[i], preferred_element_type=f32)

    # ---- fused x matmul: cols [0:h) = x@w1 + b1 ; cols [64:64+h) = x@w3x + b3 ----
    xw = mm(data, 0) + b[0:1]
    h1 = jnp.maximum(xw, 0.0)                       # valid in lanes [0:hidden)
    h1b = jnp.maximum(mm(h1, 1) + b[1:2], 0.0)      # valid in lanes [0:hidden)

    # ---- q(y|x): logits live at lanes [x_dim : x_dim+y) (same lanes as u in data);
    # every other lane is ~ -1e30 so the 128-lane softmaxes are exact. ----
    logits = mm(h1b, 2) + b[2:3]
    prob = _softmax_lanes(logits)

    in_u = (lane >= x_dim) & (lane < x_dim + y)
    u_safe = jnp.where(in_u, data, 0.5)             # keep non-u lanes finite under log
    gumbel = -jnp.log(-jnp.log(u_safe + GUMBEL_EPS) + GUMBEL_EPS)
    pert = logits + gumbel
    if inv_temp != 1.0:                             # compile-time constant
        pert = pert * inv_temp
    ycat = _softmax_lanes(pert)                     # padded lanes are exactly 0
    # TODO(synk): hard=1 straight-through (argmax one-hot) Gumbel path not
    # implemented; the module's default forward uses hard=0.

    # ---- q(z|x,y): concat(x,y)@w3 == x@w3x (already in xw cols [64:64+h)) + y@w3y ----
    h2 = jnp.maximum(xw + mm(ycat, 3), 0.0)         # valid in lanes [64:64+hidden)
    h2b = jnp.maximum(mm(h2, 4) + b[3:4], 0.0)      # valid in lanes [0:hidden)
    head = mm(h2b, 5) + b[4:5]                      # mu @ [0:z), raw_var @ [z:2z)
    sp = jax.nn.softplus(head)                      # var @ [z:2z)

    # gaussian sample at output lanes [2z:3z): align mu, eps, var there (XLU rolls)
    eps_off = x_dim + y
    gauss = (_place(head, 0, 2 * z)
             + _place(data, eps_off, 2 * z) * jnp.sqrt(_place(sp, z, 2 * z) + 1e-10))

    # ---- assemble packed 128-lane output row in registers -> ONE full-width store ----
    out = jnp.where(lane < z, head, sp)                                  # mu | var
    out = jnp.where((lane >= 2 * z) & (lane < 3 * z), gauss, out)        # gaussian
    out = jnp.where((lane >= 3 * z) & (lane < 3 * z + y),
                    _place(logits, x_dim, 3 * z), out)                   # logits
    out = jnp.where((lane >= 3 * z + y) & (lane < 3 * z + 2 * y),
                    _place(prob, x_dim, 3 * z + y), out)                 # prob_cat
    out = jnp.where((lane >= 3 * z + 2 * y) & (lane < 3 * z + 3 * y),
                    _place(ycat, x_dim, 3 * z + 2 * y), out)             # categorical
    out = jnp.where(lane < 3 * z + 3 * y, out, 0.0)                      # zero tail
    out_ref[...] = out


# --------------------------------------------------------------------------- #
# parameter construction / packing
# --------------------------------------------------------------------------- #
def make_params(key, x_dim, z_dim, y_dim, hidden=50, dtype=jnp.float32):
    """Deterministic synthetic parameters (shapes match the PyTorch module)."""
    def lin(k, fan_in, fan_out):
        kw, kb = jax.random.split(k)
        bound = 1.0 / jnp.sqrt(fan_in)
        w = jax.random.uniform(kw, (fan_in, fan_out), dtype, -bound, bound)
        b = jax.random.uniform(kb, (1, fan_out), dtype, -bound, bound)
        return w, b

    ks = jax.random.split(key, 7)
    w1, b1 = lin(ks[0], x_dim, hidden)            # qyx Linear(x_dim, 50)
    w2, b2 = lin(ks[1], hidden, hidden)           # qyx Linear(50, 50)
    wlog, blog = lin(ks[2], hidden, y_dim)        # GumbelSoftmax logits Linear(50, y_dim)
    w3, b3 = lin(ks[3], x_dim + y_dim, hidden)    # qzyx Linear(x_dim + y_dim, 50)
    w4, b4 = lin(ks[4], hidden, hidden)           # qzyx Linear(50, 50)
    wmu, bmu = lin(ks[5], hidden, z_dim)          # Gaussian mu Linear(50, z_dim)
    wvar, bvar = lin(ks[6], hidden, z_dim)        # Gaussian var Linear(50, z_dim)
    return dict(w1=w1, b1=b1, w2=w2, b2=b2, wlog=wlog, blog=blog,
                w3=w3, b3=b3, w4=w4, b4=b4, wmu=wmu, bmu=bmu, wvar=wvar, bvar=bvar)


def pack_inference_net_params(params, x_dim, hidden, y_dim, z_dim,
                              matmul_dtype=jnp.bfloat16):
    """Pack all 16 weight/bias tensors into two tile-aligned slabs (build once)."""
    assert hidden <= W3X_COL, "fused x-weight plane needs hidden <= 64"
    assert x_dim + y_dim <= LANE and 2 * z_dim <= LANE
    assert x_dim + y_dim + z_dim <= LANE, "packed data plane exceeds 128 lanes"

    w = jnp.zeros((6, LANE, LANE), jnp.float32)
    # plane 0: fused x-input matmul  [ w1 | w3x ]
    w = w.at[0, :x_dim, :hidden].set(params["w1"])
    w = w.at[0, :x_dim, W3X_COL:W3X_COL + hidden].set(params["w3"][:x_dim])
    # plane 1: w2
    w = w.at[1, :hidden, :hidden].set(params["w2"])
    # plane 2: wlog, columns aligned with u's lane position (no gumbel roll needed)
    w = w.at[2, :hidden, x_dim:x_dim + y_dim].set(params["wlog"])
    # plane 3: w3y, rows aligned with y's lanes, columns aligned with xw's w3x block
    w = w.at[3, x_dim:x_dim + y_dim, W3X_COL:W3X_COL + hidden].set(params["w3"][x_dim:])
    # plane 4: w4, rows aligned with h2's lanes
    w = w.at[4, W3X_COL:W3X_COL + hidden, :hidden].set(params["w4"])
    # plane 5: fused Gaussian head [ mu | var ]
    w = w.at[5, :hidden, :z_dim].set(params["wmu"])
    w = w.at[5, :hidden, z_dim:2 * z_dim].set(params["wvar"])
    w = w.astype(matmul_dtype)

    b = jnp.zeros((8, LANE), jnp.float32)
    b = b.at[0, :hidden].set(params["b1"][0])
    b = b.at[0, W3X_COL:W3X_COL + hidden].set(params["b3"][0])
    b = b.at[1, :hidden].set(params["b2"][0])
    b = b.at[2, :].set(NEG_INF)                       # kill padded logit lanes
    b = b.at[2, x_dim:x_dim + y_dim].set(params["blog"][0])
    b = b.at[3, :hidden].set(params["b4"][0])
    b = b.at[4, :z_dim].set(params["bmu"][0])
    b = b.at[4, z_dim:2 * z_dim].set(params["bvar"][0])
    return w, b


# --------------------------------------------------------------------------- #
# wrapper
# --------------------------------------------------------------------------- #
def inference_net_forward(x, params, u_noise, eps_noise, temperature=1.0,
                          matmul_dtype=jnp.bfloat16, max_batch_tile=512):
    f32 = jnp.float32
    B, x_dim = x.shape
    hidden = params["w2"].shape[0]
    y_dim = params["wlog"].shape[1]
    z_dim = params["wmu"].shape[1]
    assert 3 * z_dim + 3 * y_dim <= LANE, "packed output exceeds one 128-lane slab"

    w_slab, b_slab = pack_inference_net_params(params, x_dim, hidden, y_dim,
                                               z_dim, matmul_dtype)

    # 1-D "parallel" grid over the batch.  Split into >= 2 steps when possible so
    # v7x's two TensorCores both get work; costs one extra ~0.35us step elsewhere.
    B8 = _round_up(B, 8)
    if B8 >= 16:
        tile_b = min(max_batch_tile, _round_up((B8 + 1) // 2, 8))
    else:
        tile_b = B8
    B_pad = _round_up(B8, tile_b)
    grid = (B_pad // tile_b,)

    # single f32 data plane: x | gumbel-uniform | reparam-normal, zero padded.
    data = jnp.zeros((B_pad, LANE), f32)
    data = data.at[:B, :x_dim].set(x.astype(f32))
    data = data.at[:B, x_dim:x_dim + y_dim].set(u_noise.astype(f32))
    data = data.at[:B, x_dim + y_dim:x_dim + y_dim + z_dim].set(eps_noise.astype(f32))

    kernel = functools.partial(
        inference_net_kernel, x_dim=x_dim, y_dim=y_dim, z_dim=z_dim,
        inv_temp=1.0 / float(temperature), mm_dtype=matmul_dtype)

    packed = pl.pallas_call(
        kernel,
        out_shape=jax.ShapeDtypeStruct((B_pad, LANE), f32),
        grid=grid,
        in_specs=[
            pl.BlockSpec((tile_b, LANE), lambda i: (i, 0)),        # packed data plane
            pl.BlockSpec((6, LANE, LANE), lambda i: (0, 0, 0)),    # resident weights
            pl.BlockSpec((8, LANE), lambda i: (0, 0)),             # resident biases
        ],
        out_specs=pl.BlockSpec((tile_b, LANE), lambda i: (i, 0)),
        compiler_params=pltpu.CompilerParams(
            dimension_semantics=("parallel",)),
    )(data, w_slab, b_slab)

    packed = packed[:B]
    off = 3 * z_dim
    return {
        "mean": packed[:, 0:z_dim],
        "var": packed[:, z_dim:2 * z_dim],
        "gaussian": packed[:, 2 * z_dim:3 * z_dim],
        "logits": packed[:, off:off + y_dim],
        "prob_cat": packed[:, off + y_dim:off + 2 * y_dim],
        "categorical": packed[:, off + 2 * y_dim:off + 3 * y_dim],
    }


# --------------------------------------------------------------------------- #
# pure-JAX reference (same math, same bf16 matmul casts) for validation
# --------------------------------------------------------------------------- #
def reference_forward(x, params, u, eps, temperature, x_dim,
                      matmul_dtype=jnp.bfloat16):
    f32 = jnp.float32

    def mm(a, w):
        return jnp.dot(a.astype(matmul_dtype), w.astype(matmul_dtype),
                       preferred_element_type=f32)

    h = jax.nn.relu(mm(x, params["w1"]) + params["b1"])
    h = jax.nn.relu(mm(h, params["w2"]) + params["b2"])
    logits = mm(h, params["wlog"]) + params["blog"]
    prob = jax.nn.softmax(logits, axis=-1)
    g = -jnp.log(-jnp.log(u + GUMBEL_EPS) + GUMBEL_EPS)
    y = jax.nn.softmax((logits + g) / temperature, axis=-1)

    w3x, w3y = params["w3"][:x_dim], params["w3"][x_dim:]
    h2 = jax.nn.relu(mm(x, w3x) + mm(y, w3y) + params["b3"])
    h2 = jax.nn.relu(mm(h2, params["w4"]) + params["b4"])
    mu = mm(h2, params["wmu"]) + params["bmu"]
    var = jax.nn.softplus(mm(h2, params["wvar"]) + params["bvar"])
    z = mu + eps * jnp.sqrt(var + 1e-10)
    return {"mean": mu, "var": var, "gaussian": z, "logits": logits,
            "prob_cat": prob, "categorical": y}


if __name__ == "__main__":
    import numpy as np

    B, X_DIM, Z_DIM, Y_DIM, HIDDEN = 8, 32, 16, 8, 50

    key = jax.random.PRNGKey(0)
    k_param, k_x, k_u, k_eps = jax.random.split(key, 4)

    params = make_params(k_param, X_DIM, Z_DIM, Y_DIM, hidden=HIDDEN)
    x = jax.random.normal(k_x, (B, X_DIM), dtype=jnp.float32)
    u_noise = jax.random.uniform(k_u, (B, Y_DIM), dtype=jnp.float32)     # Gumbel base uniform
    eps_noise = jax.random.normal(k_eps, (B, Z_DIM), dtype=jnp.float32)  # reparam noise

    names = ("mean", "var", "gaussian", "logits", "prob_cat", "categorical")

    # temperature = 1.0 (module default)
    out = inference_net_forward(x, params, u_noise, eps_noise, temperature=1.0)
    out = jax.tree_util.tree_map(jax.block_until_ready, out)
    ref = reference_forward(x, params, u_noise, eps_noise, 1.0, X_DIM)
    for name in names:
        np.testing.assert_allclose(np.asarray(out[name]), np.asarray(ref[name]),
                                   rtol=1e-2, atol=1e-2)

    prob = np.asarray(out["prob_cat"])
    ycat = np.asarray(out["categorical"])
    assert np.all(np.isfinite(np.asarray(out["mean"])))
    assert np.all(np.asarray(out["var"]) > 0)
    assert np.allclose(prob.sum(-1), 1.0, atol=1e-2)
    assert np.allclose(ycat.sum(-1), 1.0, atol=1e-2)

    # temperature != 1.0 exercises the baked 1/temperature branch
    out_t = inference_net_forward(x, params, u_noise, eps_noise, temperature=0.5)
    out_t = jax.tree_util.tree_map(jax.block_until_ready, out_t)
    ref_t = reference_forward(x, params, u_noise, eps_noise, 0.5, X_DIM)
    for name in names:
        np.testing.assert_allclose(np.asarray(out_t[name]), np.asarray(ref_t[name]),
                                   rtol=1e-2, atol=1e-2)

    print("KERNEL_OK")
</pallas_src>

<mosaic_0001>
module attributes {stable_mosaic.version = 11 : i64} {
  func.func @inference_net_kernel(%arg0: i32, %arg1: memref<8x128xf32, #tpu.memory_space<vmem>>, %arg2: memref<6x128x128xbf16, #tpu.memory_space<vmem>>, %arg3: memref<8x128xf32, #tpu.memory_space<vmem>>, %arg4: memref<8x128xf32, #tpu.memory_space<vmem>>) attributes {dimension_semantics = [#tpu.dimension_semantics<parallel>], iteration_bounds = array<i64: 1>, scalar_prefetch = 0 : i64, scratch_operands = 0 : i64, tpu.core_type = #tpu.core_type<tc>, window_params = [{transform_indices = @transform_0, window_bounds = array<i64: 8, 128>}, {pipeline_mode = #tpu.pipeline_mode<synchronous>, transform_indices = @transform_1, window_bounds = array<i64: 6, 128, 128>}, {pipeline_mode = #tpu.pipeline_mode<synchronous>, transform_indices = @transform_2, window_bounds = array<i64: 8, 128>}, {transform_indices = @transform_3, window_bounds = array<i64: 8, 128>}]} {
    %c0 = arith.constant 0 : index
    %c0_0 = arith.constant 0 : index
    %0 = vector.load %arg1[%c0, %c0_0] : memref<8x128xf32, #tpu.memory_space<vmem>>, vector<8x128xf32>
    %c0_1 = arith.constant 0 : index
    %c0_2 = arith.constant 0 : index
    %1 = vector.load %arg3[%c0_1, %c0_2] : memref<8x128xf32, #tpu.memory_space<vmem>>, vector<8x128xf32>
    %2 = tpu.iota {dimensions = array<i32: 1>} : vector<8x128xi32>
    %3 = arith.truncf %0 : vector<8x128xf32> to vector<8x128xbf16>
    %c0_3 = arith.constant 0 : index
    %c0_4 = arith.constant 0 : index
    %c0_5 = arith.constant 0 : index
    %4 = vector.load %arg2[%c0_3, %c0_4, %c0_5] : memref<6x128x128xbf16, #tpu.memory_space<vmem>>, vector<1x128x128xbf16>
    %5 = vector.shape_cast %4 : vector<1x128x128xbf16> to vector<128x128xbf16>
    %cst = arith.constant dense<0.000000e+00> : vector<8x128xf32>
    %6 = tpu.matmul %3, %5, %cst {dimension_numbers = #tpu.dot_dimension_numbers<[1], [0], [0], [1], [0, 0, 1, 1], [], []>} : vector<8x128xbf16>, vector<128x128xbf16>, vector<8x128xf32> -> vector<8x128xf32>
    %7 = vector.extract_strided_slice %1 {offsets = [0, 0], sizes = [1, 128], strides = [1, 1]} : vector<8x128xf32> to vector<1x128xf32>
    %8 = vector.broadcast %7 : vector<1x128xf32> to vector<8x128xf32>
    %9 = arith.addf %6, %8 : vector<8x128xf32>
    %cst_6 = arith.constant 0.000000e+00 : f32
    %10 = vector.broadcast %cst_6 : f32 to vector<8x128xf32>
    %11 = arith.maximumf %9, %10 : vector<8x128xf32>
    %12 = arith.truncf %11 : vector<8x128xf32> to vector<8x128xbf16>
    %c1 = arith.constant 1 : index
    %c0_7 = arith.constant 0 : index
    %c0_8 = arith.constant 0 : index
    %13 = vector.load %arg2[%c1, %c0_7, %c0_8] : memref<6x128x128xbf16, #tpu.memory_space<vmem>>, vector<1x128x128xbf16>
    %14 = vector.shape_cast %13 : vector<1x128x128xbf16> to vector<128x128xbf16>
    %cst_9 = arith.constant dense<0.000000e+00> : vector<8x128xf32>
    %15 = tpu.matmul %12, %14, %cst_9 {dimension_numbers = #tpu.dot_dimension_numbers<[1], [0], [0], [1], [0, 0, 1, 1], [], []>} : vector<8x128xbf16>, vector<128x128xbf16>, vector<8x128xf32> -> vector<8x128xf32>
    %16 = vector.extract_strided_slice %1 {offsets = [1, 0], sizes = [1, 128], strides = [1, 1]} : vector<8x128xf32> to vector<1x128xf32>
    %17 = vector.broadcast %16 : vector<1x128xf32> to vector<8x128xf32>
    %18 = arith.addf %15, %17 : vector<8x128xf32>
    %cst_10 = arith.constant 0.000000e+00 : f32
    %19 = vector.broadcast %cst_10 : f32 to vector<8x128xf32>
    %20 = arith.maximumf %18, %19 : vector<8x128xf32>
    %21 = arith.truncf %20 : vector<8x128xf32> to vector<8x128xbf16>
    %c2 = arith.constant 2 : index
    %c0_11 = arith.constant 0 : index
    %c0_12 = arith.constant 0 : index
    %22 = vector.load %arg2[%c2, %c0_11, %c0_12] : memref<6x128x128xbf16, #tpu.memory_space<vmem>>, vector<1x128x128xbf16>
    %23 = vector.shape_cast %22 : vector<1x128x128xbf16> to vector<128x128xbf16>
    %cst_13 = arith.constant dense<0.000000e+00> : vector<8x128xf32>
    %24 = tpu.matmul %21, %23, %cst_13 {dimension_numbers = #tpu.dot_dimension_numbers<[1], [0], [0], [1], [0, 0, 1, 1], [], []>} : vector<8x128xbf16>, vector<128x128xbf16>, vector<8x128xf32> -> vector<8x128xf32>
    %25 = vector.extract_strided_slice %1 {offsets = [2, 0], sizes = [1, 128], strides = [1, 1]} : vector<8x128xf32> to vector<1x128xf32>
    %26 = vector.broadcast %25 : vector<1x128xf32> to vector<8x128xf32>
    %27 = arith.addf %24, %26 : vector<8x128xf32>
    %cst_14 = arith.constant dense<0xFF800000> : vector<8xf32>
    %28 = vector.multi_reduction <maximumf>, %27, %cst_14 [1] : vector<8x128xf32> to vector<8xf32>
    %29 = vector.shape_cast %28 : vector<8xf32> to vector<8x1xf32>
    %30 = vector.broadcast %29 : vector<8x1xf32> to vector<8x128xf32>
    %31 = arith.subf %27, %30 : vector<8x128xf32>
    %32 = math.exp %31 : vector<8x128xf32>
    %cst_15 = arith.constant dense<0.000000e+00> : vector<8xf32>
    %33 = vector.multi_reduction <add>, %32, %cst_15 [1] : vector<8x128xf32> to vector<8xf32>
    %34 = vector.shape_cast %33 : vector<8xf32> to vector<8x1xf32>
    %35 = tpu.reciprocal %34 {approx = true} : vector<8x1xf32> -> vector<8x1xf32>
    %36 = vector.broadcast %35 : vector<8x1xf32> to vector<8x128xf32>
    %37 = arith.mulf %32, %36 : vector<8x128xf32>
    %c32_i32 = arith.constant 32 : i32
    %38 = vector.broadcast %c32_i32 : i32 to vector<8x128xi32>
    %39 = arith.cmpi sge, %2, %38 : vector<8x128xi32>
    %c40_i32 = arith.constant 40 : i32
    %40 = vector.broadcast %c40_i32 : i32 to vector<8x128xi32>
    %41 = arith.cmpi slt, %2, %40 : vector<8x128xi32>
    %42 = arith.andi %39, %41 : vector<8x128xi1>
    %cst_16 = arith.constant 5.000000e-01 : f32
    %43 = vector.broadcast %cst_16 : f32 to vector<8x128xf32>
    %44 = arith.select %42, %0, %43 : vector<8x128xi1>, vector<8x128xf32>
    %cst_17 = arith.constant 9.99999968E-21 : f32
    %45 = vector.broadcast %cst_17 : f32 to vector<8x128xf32>
    %46 = arith.addf %44, %45 : vector<8x128xf32>
    %47 = math.log %46 : vector<8x128xf32>
    %cst_18 = arith.constant 0.000000e+00 : f32
    %48 = vector.broadcast %cst_18 : f32 to vector<8x128xf32>
    %49 = arith.subf %48, %47 : vector<8x128xf32>
    %cst_19 = arith.constant 9.99999968E-21 : f32
    %50 = vector.broadcast %cst_19 : f32 to vector<8x128xf32>
    %51 = arith.addf %49, %50 : vector<8x128xf32>
    %52 = math.log %51 : vector<8x128xf32>
    %cst_20 = arith.constant 0.000000e+00 : f32
    %53 = vector.broadcast %cst_20 : f32 to vector<8x128xf32>
    %54 = arith.subf %53, %52 : vector<8x128xf32>
    %55 = arith.addf %27, %54 : vector<8x128xf32>
    %cst_21 = arith.constant dense<0xFF800000> : vector<8xf32>
    %56 = vector.multi_reduction <maximumf>, %55, %cst_21 [1] : vector<8x128xf32> to vector<8xf32>
    %57 = vector.shape_cast %56 : vector<8xf32> to vector<8x1xf32>
    %58 = vector.broadcast %57 : vector<8x1xf32> to vector<8x128xf32>
    %59 = arith.subf %55, %58 : vector<8x128xf32>
    %60 = math.exp %59 : vector<8x128xf32>
    %cst_22 = arith.constant dense<0.000000e+00> : vector<8xf32>
    %61 = vector.multi_reduction <add>, %60, %cst_22 [1] : vector<8x128xf32> to vector<8xf32>
    %62 = vector.shape_cast %61 : vector<8xf32> to vector<8x1xf32>
    %63 = tpu.reciprocal %62 {approx = true} : vector<8x1xf32> -> vector<8x1xf32>
    %64 = vector.broadcast %63 : vector<8x1xf32> to vector<8x128xf32>
    %65 = arith.mulf %60, %64 : vector<8x128xf32>
    %66 = arith.truncf %65 : vector<8x128xf32> to vector<8x128xbf16>
    %c3 = arith.constant 3 : index
    %c0_23 = arith.constant 0 : index
    %c0_24 = arith.constant 0 : index
    %67 = vector.load %arg2[%c3, %c0_23, %c0_24] : memref<6x128x128xbf16, #tpu.memory_space<vmem>>, vector<1x128x128xbf16>
    %68 = vector.shape_cast %67 : vector<1x128x128xbf16> to vector<128x128xbf16>
    %cst_25 = arith.constant dense<0.000000e+00> : vector<8x128xf32>
    %69 = tpu.matmul %66, %68, %cst_25 {dimension_numbers = #tpu.dot_dimension_numbers<[1], [0], [0], [1], [0, 0, 1, 1], [], []>} : vector<8x128xbf16>, vector<128x128xbf16>, vector<8x128xf32> -> vector<8x128xf32>
    %70 = arith.addf %9, %69 : vector<8x128xf32>
    %cst_26 = arith.constant 0.000000e+00 : f32
    %71 = vector.broadcast %cst_26 : f32 to vector<8x128xf32>
    %72 = arith.maximumf %70, %71 : vector<8x128xf32>
    %73 = arith.truncf %72 : vector<8x128xf32> to vector<8x128xbf16>
    %c4 = arith.constant 4 : index
    %c0_27 = arith.constant 0 : index
    %c0_28 = arith.constant 0 : index
    %74 = vector.load %arg2[%c4, %c0_27, %c0_28] : memref<6x128x128xbf16, #tpu.memory_space<vmem>>, vector<1x128x128xbf16>
    %75 = vector.shape_cast %74 : vector<1x128x128xbf16> to vector<128x128xbf16>
    %cst_29 = arith.constant dense<0.000000e+00> : vector<8x128xf32>
    %76 = tpu.matmul %73, %75, %cst_29 {dimension_numbers = #tpu.dot_dimension_numbers<[1], [0], [0], [1], [0, 0, 1, 1], [], []>} : vector<8x128xbf16>, vector<128x128xbf16>, vector<8x128xf32> -> vector<8x128xf32>
    %77 = vector.extract_strided_slice %1 {offsets = [3, 0], sizes = [1, 128], strides = [1, 1]} : vector<8x128xf32> to vector<1x128xf32>
    %78 = vector.broadcast %77 : vector<1x128xf32> to vector<8x128xf32>
    %79 = arith.addf %76, %78 : vector<8x128xf32>
    %cst_30 = arith.constant 0.000000e+00 : f32
    %80 = vector.broadcast %cst_30 : f32 to vector<8x128xf32>
    %81 = arith.maximumf %79, %80 : vector<8x128xf32>
    %82 = arith.truncf %81 : vector<8x128xf32> to vector<8x128xbf16>
    %c5 = arith.constant 5 : index
    %c0_31 = arith.constant 0 : index
    %c0_32 = arith.constant 0 : index
    %83 = vector.load %arg2[%c5, %c0_31, %c0_32] : memref<6x128x128xbf16, #tpu.memory_space<vmem>>, vector<1x128x128xbf16>
    %84 = vector.shape_cast %83 : vector<1x128x128xbf16> to vector<128x128xbf16>
    %cst_33 = arith.constant dense<0.000000e+00> : vector<8x128xf32>
    %85 = tpu.matmul %82, %84, %cst_33 {dimension_numbers = #tpu.dot_dimension_numbers<[1], [0], [0], [1], [0, 0, 1, 1], [], []>} : vector<8x128xbf16>, vector<128x128xbf16>, vector<8x128xf32> -> vector<8x128xf32>
    %86 = vector.extract_strided_slice %1 {offsets = [4, 0], sizes = [1, 128], strides = [1, 1]} : vector<8x128xf32> to vector<1x128xf32>
    %87 = vector.broadcast %86 : vector<1x128xf32> to vector<8x128xf32>
    %88 = arith.addf %85, %87 : vector<8x128xf32>
    %cst_34 = arith.constant 0.000000e+00 : f32
    %89 = vector.broadcast %cst_34 : f32 to vector<8x128xf32>
    %90 = arith.maximumf %88, %89 : vector<8x128xf32>
    %91 = vector.broadcast %cst_34 : f32 to vector<8x128xf32>
    %92 = arith.subf %88, %91 : vector<8x128xf32>
    %93 = arith.cmpf one, %92, %92 : vector<8x128xf32>
    %94 = vector.broadcast %cst_34 : f32 to vector<8x128xf32>
    %95 = arith.addf %88, %94 : vector<8x128xf32>
    %96 = math.absf %92 : vector<8x128xf32>
    %cst_35 = arith.constant 0.000000e+00 : f32
    %97 = vector.broadcast %cst_35 : f32 to vector<8x128xf32>
    %98 = arith.subf %97, %96 : vector<8x128xf32>
    %99 = math.exp %98 : vector<8x128xf32>
    %100 = math.log1p %99 : vector<8x128xf32>
    %101 = arith.addf %90, %100 : vector<8x128xf32>
    %102 = arith.select %93, %95, %101 : vector<8x128xi1>, vector<8x128xf32>
    %c32_i32_36 = arith.constant 32 : i32
    %103 = tpu.dynamic_rotate %88 by %c32_i32_36 dim 1 : vector<8x128xf32>, i32 -> vector<8x128xf32>
    %c120_i32 = arith.constant 120 : i32
    %104 = tpu.dynamic_rotate %0 by %c120_i32 dim 1 : vector<8x128xf32>, i32 -> vector<8x128xf32>
    %c16_i32 = arith.constant 16 : i32
    %105 = tpu.dynamic_rotate %102 by %c16_i32 dim 1 : vector<8x128xf32>, i32 -> vector<8x128xf32>
    %cst_37 = arith.constant 1.000000e-10 : f32
    %106 = vector.broadcast %cst_37 : f32 to vector<8x128xf32>
    %107 = arith.addf %105, %106 : vector<8x128xf32>
    %108 = math.sqrt %107 : vector<8x128xf32>
    %109 = arith.mulf %104, %108 : vector<8x128xf32>
    %110 = arith.addf %103, %109 : vector<8x128xf32>
    %c16_i32_38 = arith.constant 16 : i32
    %111 = vector.broadcast %c16_i32_38 : i32 to vector<8x128xi32>
    %112 = arith.cmpi slt, %2, %111 : vector<8x128xi32>
    %113 = arith.select %112, %88, %102 : vector<8x128xi1>, vector<8x128xf32>
    %c32_i32_39 = arith.constant 32 : i32
    %114 = vector.broadcast %c32_i32_39 : i32 to vector<8x128xi32>
    %115 = arith.cmpi sge, %2, %114 : vector<8x128xi32>
    %c48_i32 = arith.constant 48 : i32
    %116 = vector.broadcast %c48_i32 : i32 to vector<8x128xi32>
    %117 = arith.cmpi slt, %2, %116 : vector<8x128xi32>
    %118 = arith.andi %115, %117 : vector<8x128xi1>
    %119 = arith.select %118, %110, %113 : vector<8x128xi1>, vector<8x128xf32>
    %c48_i32_40 = arith.constant 48 : i32
    %120 = vector.broadcast %c48_i32_40 : i32 to vector<8x128xi32>
    %121 = arith.cmpi sge, %2, %120 : vector<8x128xi32>
    %c56_i32 = arith.constant 56 : i32
    %122 = vector.broadcast %c56_i32 : i32 to vector<8x128xi32>
    %123 = arith.cmpi slt, %2, %122 : vector<8x128xi32>
    %124 = arith.andi %121, %123 : vector<8x128xi1>
    %c16_i32_41 = arith.constant 16 : i32
    %125 = tpu.dynamic_rotate %27 by %c16_i32_41 dim 1 : vector<8x128xf32>, i32 -> vector<8x128xf32>
    %126 = arith.select %124, %125, %119 : vector<8x128xi1>, vector<8x128xf32>
    %c56_i32_42 = arith.constant 56 : i32
    %127 = vector.broadcast %c56_i32_42 : i32 to vector<8x128xi32>
    %128 = arith.cmpi sge, %2, %127 : vector<8x128xi32>
    %c64_i32 = arith.constant 64 : i32
    %129 = vector.broadcast %c64_i32 : i32 to vector<8x128xi32>
    %130 = arith.cmpi slt, %2, %129 : vector<8x128xi32>
    %131 = arith.andi %128, %130 : vector<8x128xi1>
    %c24_i32 = arith.constant 24 : i32
    %132 = tpu.dynamic_rotate %37 by %c24_i32 dim 1 : vector<8x128xf32>, i32 -> vector<8x128xf32>
    %133 = arith.select %131, %132, %126 : vector<8x128xi1>, vector<8x128xf32>
    %c64_i32_43 = arith.constant 64 : i32
    %134 = vector.broadcast %c64_i32_43 : i32 to vector<8x128xi32>
    %135 = arith.cmpi sge, %2, %134 : vector<8x128xi32>
    %c72_i32 = arith.constant 72 : i32
    %136 = vector.broadcast %c72_i32 : i32 to vector<8x128xi32>
    %137 = arith.cmpi slt, %2, %136 : vector<8x128xi32>
    %138 = arith.andi %135, %137 : vector<8x128xi1>
    %c32_i32_44 = arith.constant 32 : i32
    %139 = tpu.dynamic_rotate %65 by %c32_i32_44 dim 1 : vector<8x128xf32>, i32 -> vector<8x128xf32>
    %140 = arith.select %138, %139, %133 : vector<8x128xi1>, vector<8x128xf32>
    %c72_i32_45 = arith.constant 72 : i32
    %141 = vector.broadcast %c72_i32_45 : i32 to vector<8x128xi32>
    %142 = arith.cmpi slt, %2, %141 : vector<8x128xi32>
    %cst_46 = arith.constant 0.000000e+00 : f32
    %143 = vector.broadcast %cst_46 : f32 to vector<8x128xf32>
    %144 = arith.select %142, %140, %143 : vector<8x128xi1>, vector<8x128xf32>
    %c0_47 = arith.constant 0 : index
    %c0_48 = arith.constant 0 : index
    %145 = vector.load %arg4[%c0_47, %c0_48] : memref<8x128xf32, #tpu.memory_space<vmem>>, vector<8x128xf32>
    tpu.vector_store %arg4[%c0_47, %c0_48], %144 {strides = array<i32>} : memref<8x128xf32, #tpu.memory_space<vmem>>, vector<8x128xf32>,
    return
  }
  func.func @transform_0(%arg0: i32) -> (i32, i32) {
    %c0_i32 = arith.constant 0 : i32
    %c0_i32_0 = arith.constant 0 : i32
    return %arg0, %c0_i32 : i32, i32
  }
  func.func @transform_1(%arg0: i32) -> (i32, i32, i32) {
    %c0_i32 = arith.constant 0 : i32
    %c0_i32_0 = arith.constant 0 : i32
    %c0_i32_1 = arith.constant 0 : i32
    %c0_i32_2 = arith.constant 0 : i32
    return %c0_i32, %c0_i32_0, %c0_i32_1 : i32, i32, i32
  }
  func.func @transform_2(%arg0: i32) -> (i32, i32) {
    %c0_i32 = arith.constant 0 : i32
    %c0_i32_0 = arith.constant 0 : i32
    %c0_i32_1 = arith.constant 0 : i32
    return %c0_i32, %c0_i32_0 : i32, i32
  }
  func.func @transform_3(%arg0: i32) -> (i32, i32) {
    %c0_i32 = arith.constant 0 : i32
    %c0_i32_0 = arith.constant 0 : i32
    return %arg0, %c0_i32 : i32, i32
  }
}

</mosaic_0001>

<bundles_post_ra>
// kernel: tpu_custom_call.1
= control target key start
LH: loop header
LB: loop body
LE: loop exit
PB: predicated region body
PF: predicated region fallthrough
CT: control target
= control target key end

     0   :  { %8 = vsyncpa [#allocation3], 0  ;;  %s1120_s0 = inlined_call_operand.hbm [shape: f32[8,128], index: 0, kind: input, shape index: {}]   ;;  %s1121_s1 = inlined_call_operand.hbm [shape: bf16[6,128,128], index: 1, kind: input, shape index: {}]   ;;  %s1122_s2 = inlined_call_operand.hbm [shape: f32[8,128], index: 2, kind: input, shape index: {}]   ;;  %s1123_s3 = inlined_call_operand.hbm [shape: f32[8,128], index: 3, kind: output, shape index: {}]  }
   0x1   :  { %9 = vsyncpa [#allocation6], 0  ;;  %s26_s14 = sshll.u32 %s1121_s1, 4  ;;  %s27_s14 = int_to_ptr.hbm [resolvable:$true] %s26_s14 }
   0x2   :  { %10 = vsyncpa [#allocation4], 0  ;;  %s1028_s15 = smov [#allocation5]   ;;  %s16_s19 = sshll.u32 %s1120_s0, 4  ;;  %s17_s19 = int_to_ptr.hbm [resolvable:$true] %s16_s19 }
   0x3   :  { %s28_s16 = sshll.u32 %s1028_s15, 4  ;;  %s1029_s20 = smov 64   ;;  %s29_s16 = int_to_ptr.vmem [resolvable:$true] %s28_s16 }
   0x4   :  { %s1030_s21 = smov 4   ;;  %s1031_s22 = smov [#allocation2]  }
   0x5   :  { %34 = dma.hbm_to_vmem [thread:$0]  %s27_s14, 6144, %s29_s16, [#allocation6], %s1029_s20, %s1029_s20, %s1030_s21  }
   0x6   :  { %s18_s23 = sshll.u32 %s1031_s22, 4  ;;  %s40_s26 = sshll.u32 %s1122_s2, 4  ;;  %s19_s23 = int_to_ptr.vmem [resolvable:$true] %s18_s23  ;;  %s41_s26 = int_to_ptr.hbm [resolvable:$true] %s40_s26 }
   0x7   :  { %21 = dma.hbm_to_vmem [thread:$0]  %s17_s19, 128, %s19_s23, [#allocation3]  }
   0x8   :  { %s1032_s1 = smov [#allocation7]  }
   0x9   :  { %s42_s27 = sshll.u32 %s1032_s1, 4  ;;  %s43_s27 = int_to_ptr.vmem [resolvable:$true] %s42_s27 }
   0xa   :  { %45 = dma.hbm_to_vmem [thread:$0]  %s41_s26, 128, %s43_s27, [#allocation6]  }
   0xb   :  { %1022 = dma.done.wait [#allocation3], 128  }
   0xc   :  { %1023 = vsyncadd [#allocation3], 4294967168 }
   0xd   :  { %1024 = dma.done.wait [#allocation6], 6272  }
   0xe   :  { %1025 = vsyncadd [#allocation6], 4294961024  ;;  %v857_v0 = vld [vmem:[#allocation5 + $0x38] sm:$0xff]  ;;  %v856_v1 = vld [vmem:[#allocation5 + $0x30] sm:$0xff]  ;;  %v60_v39 = vlaneseq  ;;  %s1033_s0 = smov 16   ;;  %s1034_s2 = smov 32  }
   0xf   :  { %128 = vmatpush.bf16.msra.mxu0 %v857_v0  ;;  %v865_v2 = vld [vmem:[#allocation5 + $0x78] sm:$0xff]  ;;  %v864_v3 = vld [vmem:[#allocation5 + $0x70] sm:$0xff]  ;;  %v855_v4 = vld [vmem:[#allocation5 + $0x28] sm:$0xff]  ;;  %s1035_s28 = smov 120   ;;  %s1036_s29 = smov 24  }
  0x10   :  { %209 = vmatpush.bf16.msra.mxu1 %v865_v2  ;;  %v863_v5 = vld [vmem:[#allocation5 + $0x68] sm:$0xff]  ;;  %v854_v6 = vld [vmem:[#allocation5 + $0x20] sm:$0xff]  ;;  %v853_v8 = vld [vmem:[#allocation5 + $0x18] sm:$0xff]  ;;  %v1078_v40 = vand.u32 127, %v60_v39  ;;  %s1037_s30 = smov [#allocation8]   ;;  %s647_s7 = sshll.u32 %s1123_s3, 4  ;;  %s648_s7 = int_to_ptr.hbm [resolvable:$true] %s647_s7 }
  0x11   :  { %v862_v7 = vld [vmem:[#allocation5 + $0x60] sm:$0xff]  ;;  %v861_v9 = vld [vmem:[#allocation5 + $0x58] sm:$0xff]  ;;  %v852_v10 = vld [vmem:[#allocation5 + $0x10] sm:$0xff]  ;;  %s645_s4 = sshll.u32 %s1037_s30, 4  ;;  %s646_s4 = int_to_ptr.vmem [resolvable:$true] %s645_s4 }
  0x12   :  { %v860_v11 = vld [vmem:[#allocation5 + $0x50] sm:$0xff]  ;;  %v851_v12 = vld [vmem:[#allocation5 + $0x8] sm:$0xff]  ;;  %v850_v13 = vld [vmem:[#allocation5] sm:$0xff]  ;;  %vm312_vm0 = vcmp.ge.s32.totalorder %v1078_v40, 32  ;;  %vm313_vm1 = vcmp.lt.s32.totalorder %v1078_v40, 40  ;;  %vm615_vm4 = vcmp.lt.s32.totalorder %v1078_v40, 16 }
  0x13   :  { %129 = vmatpush.bf16.msra.mxu0 %v856_v1  ;;  %v1067_v14 = vld [vmem:[#allocation2] sm:$0xff]  ;;  %v859_v16 = vld [vmem:[#allocation5 + $0x48] sm:$0xff]  ;;  %v858_v17 = vld [vmem:[#allocation5 + $0x40] sm:$0xff]  ;;  %vm617_vm8 = vcmp.lt.s32.totalorder %v1078_v40, 48  ;;  %vm620_vm9 = vcmp.ge.s32.totalorder %v1078_v40, 48  ;;  %vm621_vm10 = vcmp.lt.s32.totalorder %v1078_v40, 56 }
  0x14   :  { %210 = vmatpush.bf16.msra.mxu1 %v864_v3  ;;  %v62_v15 = vpack.c.bf16 %v1067_v14, %v1067_v14  ;;  %v873_v18 = vld [vmem:[#allocation5 + $0xb8] sm:$0xff]  ;;  %v872_v19 = vld [vmem:[#allocation5 + $0xb0] sm:$0xff]  ;;  %v871_v20 = vld [vmem:[#allocation5 + $0xa8] sm:$0xff]  ;;  %vm626_vm11 = vcmp.ge.s32.totalorder %v1078_v40, 56  ;;  %vm627_vm12 = vcmp.lt.s32.totalorder %v1078_v40, 64  ;;  %vm632_vm14 = vcmp.ge.s32.totalorder %v1078_v40, 64 }
  0x15   :  { %290 = vmatpush.bf16.msra.mxu2 %v873_v18  ;;  %v870_v21 = vld [vmem:[#allocation5 + $0xa0] sm:$0xff]  ;;  %v869_v22 = vld [vmem:[#allocation5 + $0x98] sm:$0xff]  ;;  %v868_v24 = vld [vmem:[#allocation5 + $0x90] sm:$0xff]  ;;  %vm633_vm15 = vcmp.lt.s32.totalorder %v1078_v40, 72 }
  0x16   :  { %v1071_v23 = vld [vmem:[#allocation7] sm:$0xff]  ;;  %v867_v31 = vld [vmem:[#allocation5 + $0x88] sm:$0xff]  ;;  %vm314_vm2 = vmand %vm312_vm0, %vm313_vm1 }
  0x17   :  { %130 = vmatpush.bf16.msra.mxu0 %v855_v4  ;;  %v79_v25 = vperm.slane %v1071_v23, 0  ;;  %v866_v32 = vld [vmem:[#allocation5 + $0x80] sm:$0xff]  ;;  %v160_v33 = vperm.slane %v1071_v23, 1  ;;  %v315_v41 = vsel %vm314_vm2, %v1067_v14, 0.5  ;;  %v241_v49 = vperm.slane %v1071_v23, 2  ;;  %v881_v61 = vld [vmem:[#allocation5 + $0xf8] sm:$0xff]  ;;  %vm618_vm13 = vmand %vm312_vm0, %vm617_vm8 }
  0x18   :  { %211 = vmatpush.bf16.msra.mxu1 %v863_v5  ;;  %v316_v42 = vadd.f32 1e-20, %v315_v41  ;;  %400 = vmatpush.bf16.msra.mxu3 %v881_v61  ;;  %v880_v62 = vld [vmem:[#allocation5 + $0xf0] sm:$0xff]  ;;  %v879_v0 = vld [vmem:[#allocation5 + $0xe8] sm:$0xff]  ;;  %v878_v2 = vld [vmem:[#allocation5 + $0xe0] sm:$0xff] }
  0x19   :  { %291 = vmatpush.bf16.msra.mxu2 %v872_v19  ;;  %v877_v3 = vld [vmem:[#allocation5 + $0xd8] sm:$0xff]  ;;  %v876_v4 = vld [vmem:[#allocation5 + $0xd0] sm:$0xff]  ;;  %v875_v5 = vld [vmem:[#allocation5 + $0xc8] sm:$0xff] }
  0x1a   :  { %908 = vlog2.f32 %v316_v42  ;;  %v883_v18 = vld [vmem:[#allocation5 + $0x108] sm:$0xff]  ;;  %v882_v19 = vld [vmem:[#allocation5 + $0x100] sm:$0xff]  ;;  %v514_v42 = vperm.slane %v1071_v23, 4  ;;  %vm622_vm1 = vmand %vm620_vm9, %vm621_vm10 }
  0x1b   :  { %131 = vmatpush.bf16.msra.mxu0 %v854_v6  ;;  %v874_v6 = vld [vmem:[#allocation5 + $0xc0] sm:$0xff]  ;;  %vm628_vm2 = vmand %vm626_vm11, %vm627_vm12 }
  0x1c   :  { %212 = vmatpush.bf16.msra.mxu1 %v862_v7  ;;  %401 = vmatpush.bf16.msra.mxu3 %v880_v62  ;;  %v889_v7 = vld [vmem:[#allocation5 + $0x138] sm:$0xff] }
  0x1d   :  { %292 = vmatpush.bf16.msra.mxu2 %v871_v20  ;;  %v897_v20 = vld [vmem:[#allocation5 + $0x178] sm:$0xff] }
  0x1f   :  { %132 = vmatpush.bf16.msra.mxu0 %v853_v8  ;;  %v888_v8 = vld [vmem:[#allocation5 + $0x130] sm:$0xff] }
  0x20   :  { %213 = vmatpush.bf16.msra.mxu1 %v861_v9  ;;  %v909_v43 = vpop.eup %908  ;;  %402 = vmatpush.bf16.msra.mxu3 %v879_v0  ;;  %v887_v9 = vld [vmem:[#allocation5 + $0x128] sm:$0xff] }
  0x21   :  { %293 = vmatpush.bf16.msra.mxu2 %v870_v21  ;;  %v318_v44 = vmul.f32 0.6931472, %v909_v43  ;;  %v896_v21 = vld [vmem:[#allocation5 + $0x170] sm:$0xff] }
  0x23   :  { %133 = vmatpush.bf16.msra.mxu0 %v852_v10  ;;  %v319_v45 = vsub.f32 0.0, %v318_v44 }
  0x24   :  { %214 = vmatpush.bf16.msra.mxu1 %v860_v11  ;;  %403 = vmatpush.bf16.msra.mxu3 %v878_v2  ;;  %v886_v11 = vld [vmem:[#allocation5 + $0x120] sm:$0xff] }
  0x25   :  { %294 = vmatpush.bf16.msra.mxu2 %v869_v22  ;;  %v320_v46 = vadd.f32 1e-20, %v319_v45  ;;  %v895_v22 = vld [vmem:[#allocation5 + $0x168] sm:$0xff] }
  0x27   :  { %134 = vmatpush.bf16.msra.mxu0 %v851_v12  ;;  %910 = vlog2.f32 %v320_v46  ;;  %v885_v12 = vld [vmem:[#allocation5 + $0x118] sm:$0xff] }
  0x28   :  { %215 = vmatpush.bf16.msra.mxu1 %v859_v16  ;;  %404 = vmatpush.bf16.msra.mxu3 %v877_v3  ;;  %v884_v16 = vld [vmem:[#allocation5 + $0x110] sm:$0xff] }
  0x29   :  { %295 = vmatpush.bf16.msra.mxu2 %v868_v24  ;;  %v894_v24 = vld [vmem:[#allocation5 + $0x160] sm:$0xff] }
  0x2b   :  { %135 = vmatpush.bf16.msra.mxu0 %v850_v13 }
  0x2c   :  { %216 = vmatpush.bf16.msra.mxu1 %v858_v17  ;;  %405 = vmatpush.bf16.msra.mxu3 %v876_v4 }
  0x2d   :  { %296 = vmatpush.bf16.msra.mxu2 %v867_v31  ;;  %v911_v47 = vpop.eup %910 }
  0x2e   :  { %136 = vmatmul.bf16.vlgmr.msra.gmra.mxu0 %v62_v15  ;;  %v322_v48 = vmul.f32 0.6931472, %v911_v47 }
  0x2f   :  { %482 = vmatpush.bf16.msrb.mxu0 %v889_v7 }
  0x30   :  { %v323_v50 = vsub.f32 0.0, %v322_v48  ;;  %406 = vmatpush.bf16.msra.mxu3 %v875_v5  ;;  %563 = vmatpush.bf16.msrb.mxu1 %v897_v20 }
  0x31   :  { %297 = vmatpush.bf16.msra.mxu2 %v866_v32 }
  0x33   :  { %483 = vmatpush.bf16.msrb.mxu0 %v888_v8 }
  0x34   :  { %407 = vmatpush.bf16.msra.mxu3 %v874_v6  ;;  %564 = vmatpush.bf16.msrb.mxu1 %v896_v21 }
  0x37   :  { %484 = vmatpush.bf16.msrb.mxu0 %v887_v9 }
  0x38   :  { %565 = vmatpush.bf16.msrb.mxu1 %v895_v22 }
  0x3b   :  { %485 = vmatpush.bf16.msrb.mxu0 %v886_v11 }
  0x3c   :  { %566 = vmatpush.bf16.msrb.mxu1 %v894_v24 }
  0x3f   :  { %486 = vmatpush.bf16.msrb.mxu0 %v885_v12 }
  0x43   :  { %487 = vmatpush.bf16.msrb.mxu0 %v884_v16 }
  0x47   :  { %488 = vmatpush.bf16.msrb.mxu0 %v883_v18 }
  0x4b   :  { %489 = vmatpush.bf16.msrb.mxu0 %v882_v19 }
  0xab   :  { %v137_v26 = vpop.f32.mrf.mxu0 }
  0xac   :  { %v1074_v27 = vadd.f32 %v137_v26, %v79_v25  ;;  %v893_v25 = vld [vmem:[#allocation5 + $0x158] sm:$0xff]  ;;  %v892_v26 = vld [vmem:[#allocation5 + $0x150] sm:$0xff] }
  0xad   :  { %567 = vmatpush.bf16.msrb.mxu1 %v893_v25 }
  0xae   :  { %v141_v28 = vmax.f32 %v1074_v27, 0.0 }
  0xb0   :  { %v142_v29 = vpack.c.bf16 %v141_v28, %v141_v28 }
  0xb1   :  { %568 = vmatpush.bf16.msrb.mxu1 %v892_v26 }
  0xb2   :  { %217 = vmatmul.bf16.vlgmr.msra.gmra.mxu1 %v142_v29 }
  0xb3   :  { %v139_v30 = vpop.f32.mrf.mxu0 }
 0x12f   :  { %v218_v34 = vpop.f32.mrf.mxu1 }
 0x130   :  { %v219_v35 = vadd.f32 %v218_v34, %v160_v33  ;;  %v891_v33 = vld [vmem:[#allocation5 + $0x148] sm:$0xff]  ;;  %v890_v34 = vld [vmem:[#allocation5 + $0x140] sm:$0xff] }
 0x131   :  { %569 = vmatpush.bf16.msrb.mxu1 %v891_v33 }
 0x132   :  { %v222_v36 = vmax.f32 %v219_v35, 0.0  ;;  %v433_v35 = vperm.slane %v1071_v23, 3 }
 0x134   :  { %v223_v37 = vpack.c.bf16 %v222_v36, %v222_v36 }
 0x135   :  { %570 = vmatpush.bf16.msrb.mxu1 %v890_v34 }
 0x136   :  { %298 = vmatmul.bf16.vlgmr.msra.gmra.mxu2 %v223_v37 }
 0x137   :  { %v220_v38 = vpop.f32.mrf.mxu1 }
 0x1b9   :  { %v299_v51 = vpop.f32.mrf.mxu2 }
 0x1ba   :  { %v300_v52 = vadd.f32 %v299_v51, %v241_v49 }
 0x1bc   :  { %303 = vmax.xlane.f32.xlu1 %v300_v52  ;;  %v324_v53 = vadd.f32 %v323_v50, %v300_v52 }
 0x1be   :  { %325 = vmax.xlane.f32.xlu0 %v324_v53 }
 0x1c1   :  { %v301_v54 = vpop.f32.mrf.mxu2 }
 0x22f   :  { %v304_v55 = vpop.xlane.xlu1 %303 }
 0x230   :  { %v305_v56 = vsub.f32 %v300_v52, %v304_v55 }
 0x231   :  { %v326_v57 = vpop.xlane.xlu0 %325 }
 0x232   :  { %v306_v58 = vmul.f32 1.442695, %v305_v56  ;;  %v327_v59 = vsub.f32 %v324_v53, %v326_v57 }
 0x234   :  { %912 = vpow2.f32 %v306_v58  ;;  %v328_v60 = vmul.f32 1.442695, %v327_v59 }
 0x236   :  { %914 = vpow2.f32 %v328_v60 }
 0x23a   :  { %v1086_v63 = vpop.eup %912 }
 0x23b   :  { %308 = vadd.xlane.f32.xlu1 %v1086_v63 }
 0x23c   :  { %v915_v1 = vpop.eup %914 }
 0x23d   :  { %330 = vadd.xlane.f32.xlu0 %v915_v1 }
 0x254   :  { %623 = vrot.lane.b32.xlu1 %v300_v52, %s1033_s0 }
 0x2ae   :  { %v309_v60 = vpop.xlane.xlu1 %308 }
 0x2b0   :  { %v331_v10 = vpop.xlane.xlu0 %330 }
 0x2b1   :  { %916 = vrcp.f32 %v331_v10 }
 0x2b7   :  { %v917_v13 = vpop.eup %916 }
 0x2b8   :  { %v1090_v15 = vmul.f32 %v917_v13, %v915_v1 }
 0x2ba   :  { %v334_v17 = vpack.c.bf16 %v1090_v15, %v1090_v15 }
 0x2bc   :  { %408 = vmatmul.bf16.vlgmr.msra.gmra.mxu3 %v334_v17 }
 0x2c6   :  { %v624_v16 = vpop.permute.xlu1 %623 }
 0x33f   :  { %v409_v28 = vpop.f32.mrf.mxu3 }
 0x340   :  { %v413_v29 = vadd.f32 %v409_v28, %v1074_v27 }
 0x342   :  { %v414_v30 = vmax.f32 %v413_v29, 0.0 }
 0x344   :  { %v415_v31 = vpack.c.bf16 %v414_v30, %v414_v30 }
 0x346   :  { %490 = vmatmul.bf16.vlgmr.msrb.gmra.mxu0 %v415_v31 }
 0x347   :  { %v411_v32 = vpop.f32.mrf.mxu3 }
 0x3c3   :  { %v491_v36 = vpop.f32.mrf.mxu0 }
 0x3c4   :  { %v492_v37 = vadd.f32 %v491_v36, %v433_v35 }
 0x3c6   :  { %v495_v38 = vmax.f32 %v492_v37, 0.0 }
 0x3c8   :  { %v496_v39 = vpack.c.bf16 %v495_v38, %v495_v38 }
 0x3ca   :  { %571 = vmatmul.bf16.vlgmr.msrb.gmra.mxu1 %v496_v39 }
 0x3cb   :  { %v493_v41 = vpop.f32.mrf.mxu0 }
 0x447   :  { %v572_v43 = vpop.f32.mrf.mxu1 }
 0x448   :  { %v573_v27 = vadd.f32 %v572_v43, %v514_v42 }
 0x44a   :  { %v579_v44 = vand.u32 2147483647, %v573_v27  ;;  %594 = vrot.lane.b32.xlu0 %v573_v27, %s1034_s2  ;;  %v576_v23 = vmax.f32 %v573_v27, 0.0  ;;  %vm577_vm5 = vcmp.ne.f32.partialorder %v573_v27, %v573_v27 }
 0x44c   :  { %v580_v45 = vsub.f32 0.0, %v579_v44 }
 0x44e   :  { %v581_v46 = vmul.f32 1.442695, %v580_v45 }
 0x44f   :  { %v574_v47 = vpop.f32.mrf.mxu1 }
 0x450   :  { %918 = vpow2.f32 %v581_v46 }
 0x456   :  { %v919_v48 = vpop.eup %918 }
 0x457   :  { %v583_v49 = vadd.f32 1.0, %v919_v48  ;;  %v586_v50 = vmul.f32 -0.5, %v919_v48  ;;  %v589_v52 = vand.u32 2147483647, %v919_v48 }
 0x459   :  { %920 = vlog2.f32 %v583_v49  ;;  %v587_v51 = vadd.f32 1.0, %v586_v50  ;;  %vm590_vm3 = vcmp.lt.f32.partialorder %v589_v52, 0.0004427343 }
 0x45a   :  { %922 = vrcp.f32 %v309_v60 }
 0x45b   :  { %v588_v55 = vmul.f32 %v919_v48, %v587_v51 }
 0x45f   :  { %v921_v53 = vpop.eup %920 }
 0x460   :  { %v585_v54 = vmul.f32 0.6931472, %v921_v53  ;;  %v923_v61 = vpop.eup %922 }
 0x461   :  { %v311_v62 = vmul.f32 %v923_v61, %v1086_v63 }
 0x462   :  { %v591_v56 = vsel %vm590_vm3, %v588_v55, %v585_v54  ;;  %vm634_vm3 = vmand %vm632_vm14, %vm633_vm15 }
 0x463   :  { %v592_v57 = vadd.f32 %v591_v56, %v576_v23 }
 0x465   :  { %v593_v58 = vsel %vm577_vm5, %v573_v27, %v592_v57 }
 0x466   :  { %598 = vrot.lane.b32.xlu2 %v593_v58, %s1033_s0  ;;  %v616_v59 = vsel %vm615_vm4, %v573_v27, %v593_v58 }
 0x46e   :  { %596 = vrot.lane.b32.xlu2 %v1067_v14, %s1035_s28 }
 0x476   :  { %629 = vrot.lane.b32.xlu2 %v311_v62, %s1036_s29 }
 0x47e   :  { %635 = vrot.lane.b32.xlu2 %v1090_v15, %s1034_s2 }
 0x4bc   :  { %v595_v13 = vpop.permute.xlu0 %594 }
 0x4c0   :  { %v599_v0 = vpop.permute.xlu2 %598 }
 0x4c1   :  { %v600_v1 = vadd.f32 1e-10, %v599_v0 }
 0x4c3   :  { %924 = vrsqrt.f32 %v600_v1  ;;  %vm608_vm6 = vcmp.eq.f32.partialorder %v600_v1, inf  ;;  %v611_v10 = vand.u32 2147483648, %v600_v1  ;;  %vm610_vm7 = vcmp.eq.f32.partialorder %v600_v1, 0.0 }
 0x4c8   :  { %v597_v4 = vpop.permute.xlu2 %596 }
 0x4c9   :  { %v925_v2 = vpop.eup %924 }
 0x4ca   :  { %v602_v3 = vmul.f32 %v925_v2, %v600_v1 }
 0x4cc   :  { %v603_v5 = vmul.f32 %v925_v2, %v602_v3 }
 0x4ce   :  { %v604_v6 = vmul.f32 0.5, %v603_v5 }
 0x4d0   :  { %v605_v7 = vsub.f32 1.5, %v604_v6  ;;  %v630_v14 = vpop.permute.xlu2 %629 }
 0x4d2   :  { %v606_v8 = vmul.f32 %v925_v2, %v605_v7 }
 0x4d4   :  { %v607_v9 = vmul.f32 %v606_v8, %v600_v1 }
 0x4d6   :  { %v609_v63 = vsel %vm608_vm6, %v600_v1, %v607_v9 }
 0x4d7   :  { %v612_v11 = vsel %vm610_vm7, %v611_v10, %v609_v63 }
 0x4d8   :  { %v613_v12 = vmul.f32 %v612_v11, %v597_v4  ;;  %v636_v20 = vpop.permute.xlu2 %635 }
 0x4da   :  { %v614_v15 = vadd.f32 %v613_v12, %v595_v13 }
 0x4dc   :  { %v619_v17 = vsel %vm618_vm13, %v614_v15, %v616_v59 }
 0x4dd   :  { %v625_v18 = vsel %vm622_vm1, %v624_v16, %v619_v17 }
 0x4de   :  { %v631_v19 = vsel %vm628_vm2, %v630_v14, %v625_v18 }
 0x4df   :  { %v637_v21 = vsel %vm634_vm3, %v636_v20, %v631_v19 }
 0x4e0   :  { %v638_v22 = vsel %vm633_vm15, %v637_v21, 0.0 }
 0x4e1   :  { %639 = vst [vmem:[#allocation8] sm:$0xff] %v638_v22 }
 0x4e2   :  { %650 = dma.vmem_to_hbm [thread:$0]  %s646_s4, 128, %s648_s7, [#allocation4]  }
 0x4e3   :  { %1026 = dma.done.wait [#allocation4], 128  }
 0x4e4   :  { %1027 = vsyncadd [#allocation4], 4294967168 }
 0x4e5   :  { %655 = vsyncpa [#allocation3], 1 }
 0x4e6   :  { %656 = vsyncpa [#allocation6], 1 }
 0x4e7   :  { %657 = vsyncpa [#allocation4], 1 }

</bundles_post_ra>
